<compile_context>
chip_gen: v5e
topology: v5e:2x2
jax: 0.10.0
libtpu: 0.0.40
codegen_flags: <defaults>
</compile_context>

<pallas_src>
import jax
import jax.numpy as jnp
from jax.experimental import pallas as pl
from jax.experimental.pallas import tpu as pltpu


def se_kernel(x_ref, w1_ref, b1_ref, w2_ref, b2_ref, o_ref):
    # x_ref: (Bp, Cp)   w1_ref: (Cp, Hd)  b1_ref: (1, Hd)
    # w2_ref: (Hd, Cp)  b2_ref: (1, Cp)   o_ref: (Bp, Cp)
    x = x_ref[...]  # f32, lane-dense (Cp multiple of 128)

    # "Squeeze": AvgPool2d(1) is identity -> pooled vector is x itself.
    # Excite 1: Linear(C -> Hd) + ReLU.  Contraction over Cp -> MXU.
    h = jnp.dot(x, w1_ref[...], preferred_element_type=jnp.float32) + b1_ref[...]
    h = jnp.maximum(h, 0.0)  # (Bp, Hd)

    # Excite 2: Linear(Hd -> C).  K = Hd is tiny; do it as Hd broadcast
    # multiply-adds on the VPU instead of a second MXU round trip.
    hd = w2_ref.shape[0]
    s = h[:, 0:1] * w2_ref[0:1, :] + b2_ref[...]           # (Bp, Cp)
    for k in range(1, hd):                                  # static unroll
        s = s + h[:, k:k + 1] * w2_ref[k:k + 1, :]

    s = jax.nn.sigmoid(s)  # EUP; same formulation as the reference

    # Gate + residual: x*s + x == x*(s + 1)
    o_ref[...] = (x * (s + 1.0)).astype(o_ref.dtype)


def se_forward(x, w1, b1, w2, b2):
    """x: (B, C, 1, 1) float32.  Returns (B, C, 1, 1)."""
    B, C, H, W = x.shape
    assert H == 1 and W == 1, "SE.forward as written requires H == W == 1"
    Hd = w1.shape[1]

    # Pad to a lane-dense layout: rows -> multiple of 8 sublanes,
    # channels -> multiple of 128 lanes (unmasked loads/stores in the kernel).
    Bp = ((B + 7) // 8) * 8
    Cp = ((C + 127) // 128) * 128

    x2d = jnp.pad(x.reshape(B, C), ((0, Bp - B), (0, Cp - C)))
    w1p = jnp.pad(w1, ((0, Cp - C), (0, 0)))            # zero rows: no effect
    b1p = b1.reshape(1, Hd)
    w2p = jnp.pad(w2, ((0, 0), (0, Cp - C)))            # zero cols: padded out cols
    b2p = jnp.pad(b2.reshape(1, C), ((0, 0), (0, Cp - C)))

    vmem_spec = pl.BlockSpec(memory_space=pltpu.MemorySpace.VMEM)
    out2d = pl.pallas_call(
        se_kernel,
        out_shape=jax.ShapeDtypeStruct((Bp, Cp), x.dtype),
        in_specs=[vmem_spec] * 5,
        out_specs=vmem_spec,
    )(x2d, w1p, b1p, w2p, b2p)

    return out2d[:B, :C].reshape(B, C, 1, 1)


def se_reference(x, w1, b1, w2, b2):
    B, C, _, _ = x.shape
    y = x.reshape(B, C)
    h = jnp.maximum(y @ w1 + b1, 0.0)
    s = jax.nn.sigmoid(h @ w2 + b2)
    y = x * s.reshape(B, C, 1, 1)
    return y + x


if __name__ == "__main__":
    # nin = nout = 64, reduce = 16 -> hidden = 4;  input (B, C, 1, 1)
    B, C, reduce = 8, 64, 16
    Hd = C // reduce

    key = jax.random.PRNGKey(0)
    kx, k1, k2, k3, k4 = jax.random.split(key, 5)

    x = jax.random.normal(kx, (B, C, 1, 1), dtype=jnp.float32)

    # Linear-style init (uniform in +/- 1/sqrt(fan_in)), stored pre-transposed
    # so the kernel computes y @ W (PyTorch does y @ W.T).
    bound1 = 1.0 / (C ** 0.5)
    w1 = jax.random.uniform(k1, (C, Hd), jnp.float32, -bound1, bound1)
    b1 = jax.random.uniform(k2, (Hd,), jnp.float32, -bound1, bound1)
    bound2 = 1.0 / (Hd ** 0.5)
    w2 = jax.random.uniform(k3, (Hd, C), jnp.float32, -bound2, bound2)
    b2 = jax.random.uniform(k4, (C,), jnp.float32, -bound2, bound2)

    out = se_forward(x, w1, b1, w2, b2)
    out = jax.block_until_ready(out)

    ref = se_reference(x, w1, b1, w2, b2)
    assert out.shape == (B, C, 1, 1)
    assert jnp.allclose(out, ref, atol=1e-5, rtol=1e-5), "mismatch vs reference"

    print("KERNEL_OK")
</pallas_src>

<mosaic_0001>
module attributes {stable_mosaic.version = 11 : i64} {
  func.func @se_kernel(%arg0: memref<8x128xf32, #tpu.memory_space<vmem>>, %arg1: memref<128x4xf32, #tpu.memory_space<vmem>>, %arg2: memref<1x4xf32, #tpu.memory_space<vmem>>, %arg3: memref<4x128xf32, #tpu.memory_space<vmem>>, %arg4: memref<1x128xf32, #tpu.memory_space<vmem>>, %arg5: memref<8x128xf32, #tpu.memory_space<vmem>>) attributes {dimension_semantics = [], scalar_prefetch = 0 : i64, scratch_operands = 0 : i64, tpu.core_type = #tpu.core_type<tc>} {
    %c0 = arith.constant 0 : index
    %c0_0 = arith.constant 0 : index
    %0 = vector.load %arg0[%c0, %c0_0] : memref<8x128xf32, #tpu.memory_space<vmem>>, vector<8x128xf32>
    %c0_1 = arith.constant 0 : index
    %c0_2 = arith.constant 0 : index
    %1 = vector.load %arg1[%c0_1, %c0_2] : memref<128x4xf32, #tpu.memory_space<vmem>>, vector<128x4xf32>
    %cst = arith.constant dense<0.000000e+00> : vector<8x4xf32>
    %2 = tpu.matmul %0, %1, %cst {dimension_numbers = #tpu.dot_dimension_numbers<[1], [0], [0], [1], [0, 0, 1, 1], [], []>} : vector<8x128xf32>, vector<128x4xf32>, vector<8x4xf32> -> vector<8x4xf32>
    %c0_3 = arith.constant 0 : index
    %c0_4 = arith.constant 0 : index
    %3 = vector.load %arg2[%c0_3, %c0_4] : memref<1x4xf32, #tpu.memory_space<vmem>>, vector<1x4xf32>
    %4 = vector.broadcast %3 : vector<1x4xf32> to vector<8x4xf32>
    %5 = arith.addf %2, %4 : vector<8x4xf32>
    %cst_5 = arith.constant 0.000000e+00 : f32
    %6 = vector.broadcast %cst_5 : f32 to vector<8x4xf32>
    %7 = arith.maximumf %5, %6 : vector<8x4xf32>
    %8 = vector.extract_strided_slice %7 {offsets = [0, 0], sizes = [8, 1], strides = [1, 1]} : vector<8x4xf32> to vector<8x1xf32>
    %c0_6 = arith.constant 0 : index
    %c0_7 = arith.constant 0 : index
    %9 = vector.load %arg3[%c0_6, %c0_7] : memref<4x128xf32, #tpu.memory_space<vmem>>, vector<1x128xf32>
    %10 = vector.broadcast %8 : vector<8x1xf32> to vector<8x128xf32>
    %11 = vector.broadcast %9 : vector<1x128xf32> to vector<8x128xf32>
    %12 = arith.mulf %10, %11 : vector<8x128xf32>
    %c0_8 = arith.constant 0 : index
    %c0_9 = arith.constant 0 : index
    %13 = vector.load %arg4[%c0_8, %c0_9] : memref<1x128xf32, #tpu.memory_space<vmem>>, vector<1x128xf32>
    %14 = vector.broadcast %13 : vector<1x128xf32> to vector<8x128xf32>
    %15 = arith.addf %12, %14 : vector<8x128xf32>
    %16 = vector.extract_strided_slice %7 {offsets = [0, 1], sizes = [8, 1], strides = [1, 1]} : vector<8x4xf32> to vector<8x1xf32>
    %c1 = arith.constant 1 : index
    %c0_10 = arith.constant 0 : index
    %17 = vector.load %arg3[%c1, %c0_10] : memref<4x128xf32, #tpu.memory_space<vmem>>, vector<1x128xf32>
    %18 = vector.broadcast %16 : vector<8x1xf32> to vector<8x128xf32>
    %19 = vector.broadcast %17 : vector<1x128xf32> to vector<8x128xf32>
    %20 = arith.mulf %18, %19 : vector<8x128xf32>
    %21 = arith.addf %15, %20 : vector<8x128xf32>
    %22 = vector.extract_strided_slice %7 {offsets = [0, 2], sizes = [8, 1], strides = [1, 1]} : vector<8x4xf32> to vector<8x1xf32>
    %c2 = arith.constant 2 : index
    %c0_11 = arith.constant 0 : index
    %23 = vector.load %arg3[%c2, %c0_11] : memref<4x128xf32, #tpu.memory_space<vmem>>, vector<1x128xf32>
    %24 = vector.broadcast %22 : vector<8x1xf32> to vector<8x128xf32>
    %25 = vector.broadcast %23 : vector<1x128xf32> to vector<8x128xf32>
    %26 = arith.mulf %24, %25 : vector<8x128xf32>
    %27 = arith.addf %21, %26 : vector<8x128xf32>
    %28 = vector.extract_strided_slice %7 {offsets = [0, 3], sizes = [8, 1], strides = [1, 1]} : vector<8x4xf32> to vector<8x1xf32>
    %c3 = arith.constant 3 : index
    %c0_12 = arith.constant 0 : index
    %29 = vector.load %arg3[%c3, %c0_12] : memref<4x128xf32, #tpu.memory_space<vmem>>, vector<1x128xf32>
    %30 = vector.broadcast %28 : vector<8x1xf32> to vector<8x128xf32>
    %31 = vector.broadcast %29 : vector<1x128xf32> to vector<8x128xf32>
    %32 = arith.mulf %30, %31 : vector<8x128xf32>
    %33 = arith.addf %27, %32 : vector<8x128xf32>
    %34 = arith.negf %33 : vector<8x128xf32>
    %35 = math.exp %34 : vector<8x128xf32>
    %cst_13 = arith.constant 1.000000e+00 : f32
    %36 = vector.broadcast %cst_13 : f32 to vector<8x128xf32>
    %37 = arith.addf %36, %35 : vector<8x128xf32>
    %38 = arith.divf %36, %37 : vector<8x128xf32>
    %cst_14 = arith.constant 1.000000e+00 : f32
    %39 = vector.broadcast %cst_14 : f32 to vector<8x128xf32>
    %40 = arith.addf %38, %39 : vector<8x128xf32>
    %41 = arith.mulf %0, %40 : vector<8x128xf32>
    %c0_15 = arith.constant 0 : index
    %c0_16 = arith.constant 0 : index
    %42 = vector.load %arg5[%c0_15, %c0_16] : memref<8x128xf32, #tpu.memory_space<vmem>>, vector<8x128xf32>
    tpu.vector_store %arg5[%c0_15, %c0_16], %41 {strides = array<i32>} : memref<8x128xf32, #tpu.memory_space<vmem>>, vector<8x128xf32>,
    return
  }
}

</mosaic_0001>

<bundles_post_ra>
// kernel: tpu_custom_call.1
= control target key start
LH: loop header
LB: loop body
LE: loop exit
PB: predicated region body
PF: predicated region fallthrough
CT: control target
= control target key end

     0   :  { %s292_s0 = inlined_call_operand.vmem [shape: f32[8,128], index: 0, kind: input, shape index: {}]   ;;  %s293_s1 = inlined_call_operand.vmem [shape: f32[128,4], index: 1, kind: input, shape index: {}]   ;;  %s294_s2 = inlined_call_operand.vmem [shape: f32[1,4], index: 2, kind: input, shape index: {}]   ;;  %s295_s3 = inlined_call_operand.vmem [shape: f32[4,128], index: 3, kind: input, shape index: {}]   ;;  %s296_s4 = inlined_call_operand.vmem [shape: f32[1,128], index: 4, kind: input, shape index: {}]   ;;  %s297_s5 = inlined_call_operand.hbm [shape: f32[8,128], index: 5, kind: output, shape index: {}]  }
   0x1   :  { %v37_v0 = vld [vmem:[%s293_s1 + $0x78] sm:$0xff]  ;;  %v36_v1 = vld [vmem:[%s293_s1 + $0x70] sm:$0xff]  ;;  %v35_v2 = vld [vmem:[%s293_s1 + $0x68] sm:$0xff] }
   0x2   :  { %42 = vmatpush.msra.mxu0 %v37_v0  ;;  %v34_v3 = vld [vmem:[%s293_s1 + $0x60] sm:$0xff]  ;;  %v33_v4 = vld [vmem:[%s293_s1 + $0x58] sm:$0xff]  ;;  %v32_v5 = vld [vmem:[%s293_s1 + $0x50] sm:$0xff] }
   0x4   :  { %43 = vmatpush.msra.mxu0 %v36_v1 }
   0x6   :  { %44 = vmatpush.msra.mxu0 %v35_v2 }
   0x8   :  { %45 = vmatpush.msra.mxu0 %v34_v3 }
   0x9   :  { %10 = vsyncpa [#allocation3], 0  ;;  %v31_v6 = vld [vmem:[%s293_s1 + $0x48] sm:$0xff]  ;;  %v30_v7 = vld [vmem:[%s293_s1 + $0x40] sm:$0xff]  ;;  %v185_v17 = vmov 2   ;;  %v186_v18 = vmov 0  }
   0xa   :  { %46 = vmatpush.msra.mxu0 %v33_v4  ;;  %v29_v8 = vld [vmem:[%s293_s1 + $0x38] sm:$0xff]  ;;  %v28_v9 = vld [vmem:[%s293_s1 + $0x30] sm:$0xff]  ;;  %v27_v10 = vld [vmem:[%s293_s1 + $0x28] sm:$0xff]  ;;  %146 = vset.pattern.permute.xlu1 %v185_v17  ;;  %v187_v23 = vmov 3   ;;  %v188_v24 = vmov 1   ;;  %s129_s13 = sshll.u32 %s297_s5, 4  ;;  %s130_s13 = int_to_ptr.hbm [resolvable:$true] %s129_s13 }
   0xb   :  { %v26_v11 = vld [vmem:[%s293_s1 + $0x20] sm:$0xff]  ;;  %v25_v12 = vld [vmem:[%s293_s1 + $0x18] sm:$0xff]  ;;  %v24_v13 = vld [vmem:[%s293_s1 + $0x10] sm:$0xff]  ;;  %144 = vset.pattern.permute.xlu0 %v186_v18 }
   0xc   :  { %47 = vmatpush.msra.mxu0 %v32_v5  ;;  %v23_v14 = vld [vmem:[%s293_s1 + $0x8] sm:$0xff]  ;;  %v22_v15 = vld [vmem:[%s293_s1] sm:$0xff] }
   0xd   :  { %v21_v16 = vld [vmem:[%s292_s0] sm:$0xff] }
   0xe   :  { %48 = vmatpush.msra.mxu0 %v31_v6  ;;  %v149_v19 = vld [vmem:[%s294_s2] ss:$0 sm:$0xff]  ;;  %v154_v30 = vld [vmem:[%s295_s3 + $0x1] ss:$0 sm:$0xff]  ;;  %v150_v31 = vld [vmem:[%s295_s3 + $0x2] ss:$0 sm:$0xff] }
   0xf   :  { %v151_v27 = vld [vmem:[%s295_s3] ss:$0 sm:$0xff]  ;;  %v153_v34 = vld [vmem:[%s295_s3 + $0x3] ss:$0 sm:$0xff]  ;;  %s189_s3 = smov [#allocation2]  }
  0x10   :  { %49 = vmatpush.msra.mxu0 %v30_v7  ;;  %v152_v28 = vld [vmem:[%s296_s4] ss:$0 sm:$0xff]  ;;  %s127_s4 = sshll.u32 %s189_s3, 4  ;;  %s128_s4 = int_to_ptr.vmem [resolvable:$true] %s127_s4 }
  0x12   :  { %50 = vmatpush.msra.mxu0 %v29_v8 }
  0x14   :  { %51 = vmatpush.msra.mxu0 %v28_v9 }
  0x16   :  { %52 = vmatpush.msra.mxu0 %v27_v10 }
  0x18   :  { %53 = vmatpush.msra.mxu0 %v26_v11 }
  0x1a   :  { %54 = vmatpush.msra.mxu0 %v25_v12 }
  0x1c   :  { %55 = vmatpush.msra.mxu0 %v24_v13 }
  0x1e   :  { %56 = vmatpush.msra.mxu0 %v23_v14 }
  0x20   :  { %57 = vmatpush.msra.mxu0 %v22_v15 }
  0x21   :  { %58 = vmatmul.f32.vlgmr.msra.gmra.mxu0 %v21_v16 }
  0x9e   :  { %v59_v20 = vpop.f32.mrf.mxu0 }
  0x9f   :  { %v60_v21 = vadd.f32 %v149_v19, %v59_v20 }
  0xa1   :  { %v62_v22 = vmax.f32 %v60_v21, 0.0 }
  0xa3   :  { %86 = vperm.xlu1 %146, %v62_v22   ;;  %66 = vperm.xlu0 %144, %v62_v22  }
  0xab   :  { %147 = vset.pattern.permute.xlu1 %v187_v23  ;;  %145 = vset.pattern.permute.xlu0 %v188_v24 }
  0xac   :  { %94 = vperm.xlu1 %147, %v62_v22   ;;  %78 = vperm.xlu0 %145, %v62_v22  }
  0xb4   :  { %148 = vset.pattern.permute.xlu0 %v187_v23 }
 0x115   :  { %v67_v25 = vpop.permute.xlu0 %66  ;;  %v87_v26 = vpop.permute.xlu1 %86 }
 0x116   :  { %v70_v29 = vmul.f32 %v151_v27, %v67_v25  ;;  %v90_v37 = vmul.f32 %v150_v31, %v87_v26 }
 0x118   :  { %v75_v33 = vadd.f32 %v152_v28, %v70_v29 }
 0x11e   :  { %v79_v32 = vpop.permute.xlu0 %78  ;;  %v95_v36 = vpop.permute.xlu1 %94 }
 0x11f   :  { %v82_v35 = vmul.f32 %v154_v30, %v79_v32  ;;  %v98_v39 = vmul.f32 %v153_v34, %v95_v36 }
 0x121   :  { %v83_v38 = vadd.f32 %v82_v35, %v75_v33 }
 0x123   :  { %v91_v40 = vadd.f32 %v90_v37, %v83_v38 }
 0x125   :  { %v99_v41 = vadd.f32 %v98_v39, %v91_v40 }
 0x127   :  { %v138_v42 = vmul.f32 -1.442695, %v99_v41 }
 0x129   :  { %155 = vpow2.f32 %v138_v42 }
 0x12f   :  { %v156_v43 = vpop.eup %155 }
 0x130   :  { %v103_v44 = vadd.f32 1.0, %v156_v43 }
 0x132   :  { %157 = vrcp.f32 %v103_v44  ;;  %v115_v48 = vand.u32 2147483648, %v103_v44  ;;  %v113_v50 = vand.u32 2147483647, %v103_v44  ;;  %vm109_vm1 = vweird.f32 %v103_v44 }
 0x134   :  { %v116_v52 = vor.u32 1.1754944e-38, %v115_v48  ;;  %vm114_vm3 = vcmp.eq.f32.partialorder %v113_v50, 8.507059e+37 }
 0x138   :  { %v158_v45 = vpop.eup %157 }
 0x139   :  { %v105_v46 = vmul.f32 %v158_v45, %v103_v44  ;;  %vm110_vm0 = vweird.f32 %v158_v45 }
 0x13a   :  { %vm111_vm2 = vmor %vm109_vm1, %vm110_vm0 }
 0x13b   :  { %v106_v47 = vsub.f32 1.0, %v105_v46 }
 0x13d   :  { %v107_v49 = vmul.f32 %v158_v45, %v106_v47 }
 0x13f   :  { %v108_v51 = vadd.f32 %v158_v45, %v107_v49 }
 0x141   :  { %v112_v53 = vsel %vm111_vm2, %v158_v45, %v108_v51 }
 0x142   :  { %v117_v54 = vsel %vm114_vm3, %v116_v52, %v112_v53 }
 0x143   :  { %v119_v55 = vadd.f32 1.0, %v117_v54 }
 0x145   :  { %v120_v56 = vmul.f32 %v119_v55, %v21_v16 }
 0x147   :  { %121 = vst [vmem:[#allocation2] sm:$0xff] %v120_v56 }
 0x148   :  { %132 = dma.vmem_to_hbm [thread:$0]  %s128_s4, 128, %s130_s13, [#allocation3]  }
 0x149   :  { %183 = dma.done.wait [#allocation3], 128  }
 0x14a   :  { %184 = vsyncadd [#allocation3], 4294967168 }
 0x14b   :  { %137 = vsyncpa [#allocation3], 1 }

</bundles_post_ra>
